<compile_context>
chip_gen: v7x
topology: tpu7x:2x2x1
jax: 0.10.0
libtpu: 0.0.40
codegen_flags: <defaults>
</compile_context>

<pallas_src>
import jax
import jax.numpy as jnp
from jax.experimental import pallas as pl
from jax.experimental.pallas import tpu as pltpu

BN_EPS = 1e-5


# ------------------------------ Pallas kernel -------------------------------

def _proj_bn_relu_kernel(w_ref, x_ref, s_ref, b_ref, o_ref):
    """o[n-tile] = relu( s * (W @ x) + b ) for one (sample, spatial-tile).

    w_ref: (Cout, Cin) bf16     -- conv weights, resident across the grid
    x_ref: (1, Cin, tm) f32     -- activation tile (cast to bf16 in-kernel)
    s_ref: (Cout, 1) f32        -- folded BN scale  gamma / sqrt(var + eps)
    b_ref: (Cout, 1) f32        -- folded BN bias   beta - mean * scale
    o_ref: (1, Cout, tm) out-dtype
    """
    x = x_ref[0].astype(jnp.bfloat16)                                   # (Cin, tm)
    acc = jnp.dot(w_ref[...], x, preferred_element_type=jnp.float32)    # (Cout, tm)
    y = acc * s_ref[...] + b_ref[...]
    o_ref[0] = jnp.maximum(y, 0.0).astype(o_ref.dtype)


# ----------------------------- tiling heuristics ------------------------------

def _vmem_capacity_bytes():
    try:
        return int(pltpu.get_tpu_info().vmem_capacity_bytes)
    except Exception:
        return 64 << 20  # conservative (v7x-sized) fallback


def _pick_tile_m(m, cin, cout, x_bytes, o_bytes, budget_bytes):
    """Largest spatial tile that keeps double-buffered tiles + resident weights
    inside the VMEM budget."""
    per_col = 2 * (cin * x_bytes + cout * o_bytes)        # dbl-buffered x / out tiles
    fixed = 2 * (cout * cin * 2) + 4 * (cout * 4)          # weight + BN scale/bias
    avail = max(budget_bytes - fixed, per_col * 128)
    max_tm = avail // per_col
    if m <= max_tm:
        return m                                           # whole per-sample extent
    return max(128, int(max_tm // 128) * 128)              # lane-aligned tile


# --------------------------- fused projection call ----------------------------

def _fused_proj_bn_relu(x_flat, w_bf, scale, bias, out_dtype):
    """x_flat: (N, Cin, M), w_bf: (Cout, Cin) bf16, scale/bias: (Cout, 1) f32
    -> (N, Cout, M) out_dtype."""
    n, cin, m = x_flat.shape
    cout = w_bf.shape[0]

    x_bytes = x_flat.dtype.itemsize
    o_bytes = jnp.dtype(out_dtype).itemsize

    cap = _vmem_capacity_bytes()
    budget = int(0.55 * cap)                               # ~35 MiB v7x / ~70 MiB v5e,v6e
    tm = _pick_tile_m(m, cin, cout, x_bytes, o_bytes, budget)

    tile_bytes = (2 * (cin * tm * x_bytes + cout * tm * o_bytes)
                  + 2 * cout * cin * 2 + 4 * cout * 4)
    vmem_limit = int(min(0.7 * cap, max(16 << 20, 2 * tile_bytes)))

    grid = (n, pl.cdiv(m, tm))

    cost = pl.CostEstimate(
        flops=2 * n * m * cin * cout,
        transcendentals=0,
        bytes_accessed=(n * m * cin * x_bytes + cout * cin * 2 + 2 * cout * 4
                        + n * m * cout * o_bytes),
    )

    return pl.pallas_call(
        _proj_bn_relu_kernel,
        out_shape=jax.ShapeDtypeStruct((n, cout, m), out_dtype),
        grid=grid,
        in_specs=[
            pl.BlockSpec((cout, cin), lambda b, i: (0, 0)),     # weights (resident)
            pl.BlockSpec((1, cin, tm), lambda b, i: (b, 0, i)),  # activation tile
            pl.BlockSpec((cout, 1), lambda b, i: (0, 0)),       # BN scale (resident)
            pl.BlockSpec((cout, 1), lambda b, i: (0, 0)),       # BN bias  (resident)
        ],
        out_specs=pl.BlockSpec((1, cout, tm), lambda b, i: (b, 0, i)),
        compiler_params=pltpu.CompilerParams(
            dimension_semantics=("parallel", "parallel"),
            vmem_limit_bytes=vmem_limit,
        ),
        cost_estimate=cost,
    )(w_bf, x_flat, scale, bias)


# ------------------------------ module wrapper -------------------------------

def resnet_shortcuts_forward(x_nchw, params, out_dtype=None):
    """ResNetShortCuts.forward: identity, or 1x1 Conv(stride) + BN + ReLU."""
    if not params["need_projection"]:
        return x_nchw

    out_dtype = x_nchw.dtype if out_dtype is None else out_dtype
    stride = params["stride"]
    w = params["w"]                                       # (Cout, Cin), 1x1 kernel
    cout, cin = w.shape

    # Fold inference-mode BatchNorm into per-channel f32 scale / bias
    # (applied post-matmul on the f32 accumulator: no bf16 double rounding).
    inv_std = jax.lax.rsqrt(params["var"].astype(jnp.float32) + BN_EPS)
    scale = (params["gamma"] * inv_std).astype(jnp.float32)
    bias = (params["beta"] - params["mean"] * scale).astype(jnp.float32)
    scale = scale.reshape(cout, 1)
    bias = bias.reshape(cout, 1)

    w_bf = w.astype(jnp.bfloat16)                         # tiny one-off cast

    # 1x1 conv, padding = kernel_size // 2 = 0, stride s == strided subsample.
    n = x_nchw.shape[0]
    xs = x_nchw if stride == 1 else x_nchw[:, :, ::stride, ::stride]   # (N,Cin,Ho,Wo)
    ho, wo = xs.shape[2], xs.shape[3]
    x_flat = xs.reshape(n, cin, ho * wo)                  # pure reshape, NCHW-native

    out = _fused_proj_bn_relu(x_flat, w_bf, scale, bias, out_dtype)    # (N,Cout,M)
    return out.reshape(n, cout, ho, wo)                   # pure reshape, no transpose


# ------------------------------- parameters ----------------------------------

def init_shortcut_params(key, in_channels, out_channels, stride=1):
    need_projection = (in_channels != out_channels) or (stride != 1)
    k = jax.random.split(key, 5)
    return {
        "need_projection": need_projection,
        "stride": stride,
        "w": 0.1 * jax.random.normal(k[0], (out_channels, in_channels), jnp.float32),
        "gamma": 1.0 + 0.1 * jax.random.normal(k[1], (out_channels,), jnp.float32),
        "beta": 0.05 * jax.random.normal(k[2], (out_channels,), jnp.float32),
        "mean": 0.1 * jax.random.normal(k[3], (out_channels,), jnp.float32),
        "var": jax.random.uniform(k[4], (out_channels,), jnp.float32, 0.5, 1.5),
    }


# ------------------------------- pure-JAX ref ---------------------------------

def _reference_forward(x_nchw, params):
    if not params["need_projection"]:
        return x_nchw
    stride = params["stride"]
    xs = x_nchw[:, :, ::stride, ::stride]
    inv_std = 1.0 / jnp.sqrt(params["var"] + BN_EPS)
    scale = params["gamma"] * inv_std
    bias = params["beta"] - params["mean"] * scale
    y = jnp.einsum("oc,nchw->nohw", params["w"], xs)
    y = y * scale[None, :, None, None] + bias[None, :, None, None]
    return jnp.maximum(y, 0.0)


# ----------------------------------- main -------------------------------------

if __name__ == "__main__":
    key = jax.random.PRNGKey(0)
    k_x, k_p = jax.random.split(key)

    batch, in_channels, out_channels, spatial, stride = 2, 4, 16, 16, 2
    x = jax.random.normal(k_x, (batch, in_channels, spatial, spatial), jnp.float32)

    params = init_shortcut_params(k_p, in_channels, out_channels, stride=stride)

    fwd = jax.jit(lambda inp: resnet_shortcuts_forward(inp, params))
    y = fwd(x)
    jax.block_until_ready(y)

    # Projection path: channels -> out_channels, spatial halved by stride.
    assert y.shape == (batch, out_channels, spatial // stride, spatial // stride), y.shape
    assert y.dtype == x.dtype
    assert bool(jnp.all(jnp.isfinite(y)))

    # Numerical check against a pure-JAX f32 reference (bf16 matmul inputs,
    # f32 accumulation and f32 BN scale/bias -> tight tolerance).
    ref = _reference_forward(x, params)
    max_err = float(jnp.max(jnp.abs(y - ref)))
    assert max_err < 2e-2, max_err

    # Identity path (in == out, stride == 1) must pass the input through unchanged.
    id_params = init_shortcut_params(k_p, in_channels, in_channels, stride=1)
    y_id = resnet_shortcuts_forward(x, id_params)
    assert bool(jnp.all(y_id == x))

    print("KERNEL_OK")
</pallas_src>

<mosaic_0001>
module attributes {stable_mosaic.version = 11 : i64} {
  func.func @_proj_bn_relu_kernel(%arg0: i32, %arg1: i32, %arg2: memref<16x4xbf16, #tpu.memory_space<vmem>>, %arg3: memref<1x4x64xf32, #tpu.memory_space<vmem>>, %arg4: memref<16x1xf32, #tpu.memory_space<vmem>>, %arg5: memref<16x1xf32, #tpu.memory_space<vmem>>, %arg6: memref<1x16x64xf32, #tpu.memory_space<vmem>>) attributes {dimension_semantics = [#tpu.dimension_semantics<parallel>, #tpu.dimension_semantics<parallel>], iteration_bounds = array<i64: 2, 1>, scalar_prefetch = 0 : i64, scratch_operands = 0 : i64, tpu.core_type = #tpu.core_type<tc>, window_params = [{pipeline_mode = #tpu.pipeline_mode<synchronous>, transform_indices = @transform_0, window_bounds = array<i64: 16, 4>}, {transform_indices = @transform_1, window_bounds = array<i64: 1, 4, 64>}, {pipeline_mode = #tpu.pipeline_mode<synchronous>, transform_indices = @transform_2, window_bounds = array<i64: 16, 1>}, {pipeline_mode = #tpu.pipeline_mode<synchronous>, transform_indices = @transform_3, window_bounds = array<i64: 16, 1>}, {transform_indices = @transform_4, window_bounds = array<i64: 1, 16, 64>}]} {
    %c0 = arith.constant 0 : index
    %c0_0 = arith.constant 0 : index
    %c0_1 = arith.constant 0 : index
    %0 = vector.load %arg3[%c0, %c0_0, %c0_1] : memref<1x4x64xf32, #tpu.memory_space<vmem>>, vector<1x4x64xf32>
    %1 = vector.shape_cast %0 : vector<1x4x64xf32> to vector<4x64xf32>
    %2 = arith.truncf %1 : vector<4x64xf32> to vector<4x64xbf16>
    %c0_2 = arith.constant 0 : index
    %c0_3 = arith.constant 0 : index
    %3 = vector.load %arg2[%c0_2, %c0_3] : memref<16x4xbf16, #tpu.memory_space<vmem>>, vector<16x4xbf16>
    %cst = arith.constant dense<0.000000e+00> : vector<16x64xf32>
    %4 = tpu.matmul %3, %2, %cst {dimension_numbers = #tpu.dot_dimension_numbers<[1], [0], [0], [1], [0, 0, 1, 1], [], []>} : vector<16x4xbf16>, vector<4x64xbf16>, vector<16x64xf32> -> vector<16x64xf32>
    %c0_4 = arith.constant 0 : index
    %c0_5 = arith.constant 0 : index
    %5 = vector.load %arg4[%c0_4, %c0_5] : memref<16x1xf32, #tpu.memory_space<vmem>>, vector<16x1xf32>
    %6 = vector.broadcast %5 : vector<16x1xf32> to vector<16x64xf32>
    %7 = arith.mulf %4, %6 : vector<16x64xf32>
    %c0_6 = arith.constant 0 : index
    %c0_7 = arith.constant 0 : index
    %8 = vector.load %arg5[%c0_6, %c0_7] : memref<16x1xf32, #tpu.memory_space<vmem>>, vector<16x1xf32>
    %9 = vector.broadcast %8 : vector<16x1xf32> to vector<16x64xf32>
    %10 = arith.addf %7, %9 : vector<16x64xf32>
    %cst_8 = arith.constant 0.000000e+00 : f32
    %11 = vector.broadcast %cst_8 : f32 to vector<16x64xf32>
    %12 = arith.maximumf %10, %11 : vector<16x64xf32>
    %c0_9 = arith.constant 0 : index
    %c0_10 = arith.constant 0 : index
    %c0_11 = arith.constant 0 : index
    %13 = vector.load %arg6[%c0_9, %c0_10, %c0_11] : memref<1x16x64xf32, #tpu.memory_space<vmem>>, vector<1x16x64xf32>
    %14 = vector.shape_cast %13 : vector<1x16x64xf32> to vector<16x64xf32>
    %15 = vector.shape_cast %12 : vector<16x64xf32> to vector<1x16x64xf32>
    tpu.vector_store %arg6[%c0_9, %c0_10, %c0_11], %15 {strides = array<i32>} : memref<1x16x64xf32, #tpu.memory_space<vmem>>, vector<1x16x64xf32>,
    return
  }
  func.func @transform_0(%arg0: i32, %arg1: i32) -> (i32, i32) {
    %c0_i32 = arith.constant 0 : i32
    %c0_i32_0 = arith.constant 0 : i32
    %c0_i32_1 = arith.constant 0 : i32
    return %c0_i32, %c0_i32_0 : i32, i32
  }
  func.func @transform_1(%arg0: i32, %arg1: i32) -> (i32, i32, i32) {
    %c0_i32 = arith.constant 0 : i32
    %c0_i32_0 = arith.constant 0 : i32
    return %arg0, %c0_i32, %arg1 : i32, i32, i32
  }
  func.func @transform_2(%arg0: i32, %arg1: i32) -> (i32, i32) {
    %c0_i32 = arith.constant 0 : i32
    %c0_i32_0 = arith.constant 0 : i32
    %c0_i32_1 = arith.constant 0 : i32
    return %c0_i32, %c0_i32_0 : i32, i32
  }
  func.func @transform_3(%arg0: i32, %arg1: i32) -> (i32, i32) {
    %c0_i32 = arith.constant 0 : i32
    %c0_i32_0 = arith.constant 0 : i32
    %c0_i32_1 = arith.constant 0 : i32
    return %c0_i32, %c0_i32_0 : i32, i32
  }
  func.func @transform_4(%arg0: i32, %arg1: i32) -> (i32, i32, i32) {
    %c0_i32 = arith.constant 0 : i32
    %c0_i32_0 = arith.constant 0 : i32
    return %arg0, %c0_i32, %arg1 : i32, i32, i32
  }
}

</mosaic_0001>

<bundles_post_ra>
// kernel: _lambda_.1
= control target key start
LH: loop header
LB: loop body
LE: loop exit
PB: predicated region body
PF: predicated region fallthrough
CT: control target
= control target key end

     0   :  { %s501_s15 = smov 0   ;;  %s503_s16 = smov 0   ;;  %s553_s0 = inlined_call_operand.vmem [shape: bf16[16,4], index: 0, kind: input, shape index: {}]   ;;  %s554_s1 = inlined_call_operand.vmem [shape: f32[2,4,64], index: 1, kind: input, shape index: {}]   ;;  %s555_s2 = inlined_call_operand.vmem [shape: f32[16,1], index: 2, kind: input, shape index: {}]   ;;  %s556_s3 = inlined_call_operand.vmem [shape: f32[16,1], index: 3, kind: input, shape index: {}]   ;;  %s557_s4 = inlined_call_operand.vmem [shape: f32[2,16,64], index: 4, kind: output, shape index: {}]  }
   0x1   :  { %s505_s17 = smov 0  }
   0x2 LB: > { %s26_s18 = sadd.s32 1, %s467_s16  ;;  %p402_p0 = scmp.ge.s32.totalorder %s471_s17, 1  ;;  %s471_s17 = sphi %s505_s17, %s14_s17   ;;  %s467_s16 = sphi %s503_s16, %s559_s16   ;;  %s463_s15 = sphi %s501_s15, %s558_s15  }
   0x3   : > { %p28_p1 = scmp.ge.s32.totalorder %s26_s18, 2  ;;  %p180_p2 = scmp.lt.s32.totalorder %s471_s17, 3 }
   0x5   : > { %s561_s18 = smov (%p28_p1, %s26_s18), 0  ;;  %p181_p3 = pnand %p402_p0, %p180_p2 }
   0x6   : > { %p211_p4 = scmp.lt.s32.totalorder (!%p181_p3), %s463_s15, 1  ;;  %v473_v0 = vmov (!%p181_p3), 0.0   ;;  %vm474_vm0 = vmmov (!%p181_p3), 0   ;;  %v285_v1 = vld [vmem:[%s555_s2] sm:$0xff] (!%p181_p3)  ;;  %v475_v2 = vmov (!%p181_p3), 0   ;;  %v286_v4 = vld [vmem:[%s555_s2 + $0x8] sm:$0xff] (!%p181_p3) }
   0x7   : > { %184 = sbr.rel (%p181_p3) target bundleno = 245 (0xf5), region = 36  ;;  %413 = vmatprep.subr.bf16.mxu0 (!%p181_p3), %v473_v0  ;;  %415 = vmatprep.mubr.msk.bf16.mxu0 (!%p181_p3), %vm474_vm0, %v473_v0  ;;  %v299_v3 = vld [vmem:[%s556_s3] sm:$0xff] (!%p181_p3)  ;;  %v300_v5 = vld [vmem:[%s556_s3 + $0x8] sm:$0xff] (!%p181_p3)  ;;  %vm240_vm1 = vcmask (!%p181_p3), 1041408   ;;  %vm236_vm2 = vcmask (!%p181_p3), 31744   ;;  %vm315_vm3 = vcmask (!%p181_p3), 523264  }
   0x8   : > { %446 = vset.pattern.permute.xlu0 (!%p181_p3), %v475_v2  ;;  %447 = vset.pattern.permute.xlu1 (!%p181_p3), %v475_v2  ;;  %v448_v9 = vld [vmem:[%s553_s0] sm:$0xff] (!%p181_p3)  }
   0x9   : > { %289 = vperm.xlu0 (!%p181_p3), %446, %v285_v1   ;;  %303 = vperm.xlu1 (!%p181_p3), %447, %v299_v3  }
   0xd   : > { %294 = vperm.xlu0 (!%p181_p3), %446, %v286_v4   ;;  %308 = vperm.xlu1 (!%p181_p3), %447, %v300_v5  }
   0xe   : > { %s563_s15 = smov (!%p211_p4, %s463_s15), 1 }
   0xf   : > { %s403_s23 = sshll.u32 %s563_s15, 2  ;;  %s410_s7 = sshll.u32 %s563_s15, 4 }
  0x10   : > { %s217_s30 = scalar_lea.vmem %s554_s1, %s403_s23  ;;  %s225_s10 = scalar_lea.vmem %s557_s4, %s410_s7 }
  0x11   : > { %v227_v6 = vld [vmem:[%s217_s30] sm:$0xf] }
  0x12   : > { %v228_v7 = vpack.c.bf16 %v227_v6, %v227_v6 }
  0x14   : > { %v242_v8 = vsel %vm240_vm1, %v228_v7, 0 }
  0x15   : > { %414 = vmatpush3.bf16.msra.mxu0 %v242_v8 }
  0x18   : > { %416 = vmatmul.mubr.msk.bf16.vlgmr.msra.gmra.mrb[0].mxu0 %vm236_vm2, %v448_v9 }
  0x88   : > { %v290_v10 = vpop.permute.xlu0 %289  ;;  %v304_v11 = vpop.permute.xlu1 %303 }
  0x8c   : > { %v295_v15 = vpop.permute.xlu0 %294  ;;  %v309_v20 = vpop.permute.xlu1 %308 }
  0xeb   : > { %v278_v12 = vpop.f32.mrb[0].mxu0 }
  0xec   : > { %v297_v13 = vmul.f32 %v290_v10, %v278_v12  ;;  %v417_v14 = vpop.f32.mrb[1].mxu0 }
  0xed   : > { %v281_v16 = vpop.f32.mrb[2].mxu0 }
  0xee   : > { %v311_v17 = vadd.f32 %v304_v11, %v297_v13  ;;  %v298_v18 = vmul.f32 %v295_v15, %v281_v16  ;;  %v418_v19 = vpop.f32.mrb[3].mxu0 }
  0xf0   : > { %v313_v21 = vmax.f32 %v311_v17, 0.0  ;;  %v312_v22 = vadd.f32 %v309_v20, %v298_v18 }
  0xf2   : > { %316 = vst.msk [vmem:[%s225_s10] sm:$0xff] %vm315_vm3, %v313_v21  ;;  %v314_v23 = vmax.f32 %v312_v22, 0.0 }
  0xf4   : > { %317 = vst.msk [vmem:[%s225_s10 + $0x8] sm:$0xff] %vm315_vm3, %v314_v23 }
  0xf5 PF: > { %s14_s17 = sadd.s32 1, %s471_s17   ;;  %s558_s15 = smov %s467_s16 }
  0xf6   : > { %p11_p5 = scmp.ge.s32.totalorder %s14_s17, 4   ;;  %s559_s16 = smov %s561_s18 }
  0xf8   :  { %13 = sbr.rel (!%p11_p5) target bundleno = 2 (0x2), region = 66 }

</bundles_post_ra>
